<compile_context>
chip_gen: v7x
topology: tpu7x:2x2x1
jax: 0.10.0
libtpu: 0.0.40
codegen_flags: <defaults>
</compile_context>

<pallas_src>
import functools

import numpy as np
import jax
import jax.numpy as jnp
from jax.experimental import pallas as pl
from jax.experimental.pallas import tpu as pltpu


def _ldam_kernel(xt_ref, tgt_ref, sm_ref, out_ref, *,
                 s: float, total_b: int, tb: int, needs_mask: bool):
    """One batch tile of LDAM cross-entropy.

    xt_ref : (C, TB)  logits, classes on sublanes, batch on lanes
    tgt_ref: (1, TB)  int32 labels
    sm_ref : (C, 1)   f32 per-class margins, pre-scaled by s (resident)
    out_ref: (1, 1)   f32 running loss sum; becomes the mean on the last step
    """
    pid = pl.program_id(0)

    @pl.when(pid == 0)
    def _():
        out_ref[...] = jnp.zeros_like(out_ref)

    x = xt_ref[...].astype(jnp.float32)          # (C, TB) — cast in-kernel
    tgt = tgt_ref[...]                           # (1, TB) int32
    sm = sm_ref[...]                             # (C, 1)  f32  (= s * m_list)
    C, TB = x.shape

    # one-hot(target) with classes along the sublane axis
    row = jax.lax.broadcasted_iota(jnp.int32, (C, TB), 0)
    onehot = (row == tgt).astype(jnp.float32)    # (C, TB)

    # scaled, margin-subtracted logits:
    #   s * (x - batch_m * onehot) == s*x - onehot * (s*m)   (fmul + fsub)
    z = s * x - onehot * sm                      # (C, TB)

    # cross-entropy over the class (sublane) axis
    zmax = jnp.max(z, axis=0, keepdims=True)                       # (1, TB)
    lse = zmax + jnp.log(jnp.sum(jnp.exp(z - zmax), axis=0,
                                 keepdims=True))                   # (1, TB)
    z_t = jnp.sum(onehot * z, axis=0, keepdims=True)               # (1, TB)
    losses = lse - z_t                                             # (1, TB)

    if needs_mask:
        # mask out padded batch columns of a partial last tile
        col = jax.lax.broadcasted_iota(jnp.int32, (1, TB), 1) + pid * tb
        losses = jnp.where(col < total_b, losses, 0.0)

    out_ref[...] += jnp.sum(losses, keepdims=True)                 # (1, 1)

    @pl.when(pid == pl.num_programs(0) - 1)
    def _():
        out_ref[...] = out_ref[...] * (1.0 / total_b)


def ldam_loss(x, target, cls_num_list, max_m=0.5, s=30.0):
    """x: (B, C) logits; target: (B,) int labels. Returns scalar mean loss."""
    # TODO(synk): optional per-class `weight` of F.cross_entropy not
    # implemented (module default is weight=None).
    B, C = x.shape
    assert C == len(cls_num_list)
    assert s > 0

    # Deterministic margin setup (mirrors the PyTorch __init__), pre-scaled by s.
    m_list = 1.0 / np.sqrt(np.sqrt(np.asarray(cls_num_list, dtype=np.float64)))
    m_list = m_list * (max_m / np.max(m_list))
    sm = jnp.asarray(float(s) * m_list, dtype=jnp.float32).reshape(C, 1)

    # Re-layout: batch on the lane axis.  No dtype cast here — any upcast
    # happens inside the kernel.
    xt = x.T                                        # (C, B)
    tgt = target.astype(jnp.int32).reshape(1, B)    # (1, B)

    # Batch tile: whole batch if it fits the budget, else a lane-aligned tile
    # sized against ~1 MiB of VMEM per buffer (double-buffered by Pallas).
    cap = max(128, min(8192, ((1 << 20) // (4 * C)) // 128 * 128))
    TB = B if B <= cap else cap
    nt = pl.cdiv(B, TB)
    needs_mask = (B % TB) != 0

    kernel = functools.partial(_ldam_kernel, s=float(s), total_b=B, tb=TB,
                               needs_mask=needs_mask)

    out = pl.pallas_call(
        kernel,
        out_shape=jax.ShapeDtypeStruct((1, 1), jnp.float32),
        grid_spec=pltpu.PrefetchScalarGridSpec(
            num_scalar_prefetch=0,
            grid=(nt,),
            in_specs=[
                pl.BlockSpec((C, TB), lambda i: (0, i)),   # logits tile
                pl.BlockSpec((1, TB), lambda i: (0, i)),   # labels tile
                pl.BlockSpec((C, 1), lambda i: (0, 0)),    # s * m_list (resident)
            ],
            out_specs=pl.BlockSpec((1, 1), lambda i: (0, 0)),
        ),
        compiler_params=pltpu.CompilerParams(
            dimension_semantics=("arbitrary",)),
    )(xt, tgt, sm)
    return out[0, 0]


def _reference(x, target, cls_num_list, max_m=0.5, s=30.0):
    m_list = 1.0 / np.sqrt(np.sqrt(np.asarray(cls_num_list, dtype=np.float64)))
    m_list = m_list * (max_m / np.max(m_list))
    m_list = jnp.asarray(m_list, dtype=jnp.float32)
    onehot = jax.nn.one_hot(target, x.shape[1], dtype=jnp.float32)
    batch_m = (onehot @ m_list)[:, None]
    out = jnp.where(onehot > 0, x - batch_m, x)
    z = s * out
    logp = jax.nn.log_softmax(z, axis=1)
    return -jnp.mean(jnp.sum(onehot * logp, axis=1))


if __name__ == "__main__":
    cls_num_list = [2780, 2050, 430, 3640, 4065, 535, 556, 410, 86,
                    728, 813, 107, 556, 410, 86, 728, 813, 107]
    C = len(cls_num_list)   # 18
    B = 8

    key = jax.random.PRNGKey(0)
    kx, kt = jax.random.split(key)
    x = jax.random.normal(kx, (B, C), dtype=jnp.float32)
    target = jax.random.randint(kt, (B,), 0, C, dtype=jnp.int32)

    loss = ldam_loss(x, target, cls_num_list)
    jax.block_until_ready(loss)

    ref = _reference(x, target, cls_num_list)
    assert jnp.allclose(loss, ref, rtol=1e-5, atol=1e-4), (loss, ref)

    print("KERNEL_OK")
</pallas_src>

<mosaic_0001>
module attributes {stable_mosaic.version = 11 : i64} {
  func.func @_ldam_kernel(%arg0: i32, %arg1: memref<18x8xf32, #tpu.memory_space<vmem>>, %arg2: memref<1x8xi32, #tpu.memory_space<vmem>>, %arg3: memref<18x1xf32, #tpu.memory_space<vmem>>, %arg4: memref<1x1xf32, #tpu.memory_space<vmem>>) attributes {dimension_semantics = [#tpu.dimension_semantics<arbitrary>], iteration_bounds = array<i64: 1>, scalar_prefetch = 0 : i64, scratch_operands = 0 : i64, tpu.core_type = #tpu.core_type<tc>, window_params = [{transform_indices = @transform_0, window_bounds = array<i64: 18, 8>}, {transform_indices = @transform_1, window_bounds = array<i64: 1, 8>}, {pipeline_mode = #tpu.pipeline_mode<synchronous>, transform_indices = @transform_2, window_bounds = array<i64: 18, 1>}, {pipeline_mode = #tpu.pipeline_mode<synchronous>, transform_indices = @transform_3, window_bounds = array<i64: 1, 1>}]} {
    %c0_i32 = arith.constant 0 : i32
    %0 = arith.cmpi eq, %arg0, %c0_i32 : i32
    %1 = arith.extui %0 : i1 to i32
    %c0_i32_0 = arith.constant 0 : i32
    %2 = arith.cmpi ne, %1, %c0_i32_0 : i32
    scf.if %2 {
      %cst_16 = arith.constant 0.000000e+00 : f32
      %40 = vector.broadcast %cst_16 : f32 to vector<1x1xf32>
      %c0_17 = arith.constant 0 : index
      %c0_18 = arith.constant 0 : index
      %41 = vector.load %arg4[%c0_17, %c0_18] : memref<1x1xf32, #tpu.memory_space<vmem>>, vector<1x1xf32>
      tpu.vector_store %arg4[%c0_17, %c0_18], %40 {strides = array<i32>} : memref<1x1xf32, #tpu.memory_space<vmem>>, vector<1x1xf32>,
    } else {
    }
    %c0 = arith.constant 0 : index
    %c0_1 = arith.constant 0 : index
    %3 = vector.load %arg1[%c0, %c0_1] : memref<18x8xf32, #tpu.memory_space<vmem>>, vector<18x8xf32>
    %c0_2 = arith.constant 0 : index
    %c0_3 = arith.constant 0 : index
    %4 = vector.load %arg2[%c0_2, %c0_3] : memref<1x8xi32, #tpu.memory_space<vmem>>, vector<1x8xi32>
    %c0_4 = arith.constant 0 : index
    %c0_5 = arith.constant 0 : index
    %5 = vector.load %arg3[%c0_4, %c0_5] : memref<18x1xf32, #tpu.memory_space<vmem>>, vector<18x1xf32>
    %6 = tpu.iota {dimensions = array<i32: 0>} : vector<18x8xi32>
    %7 = vector.broadcast %4 : vector<1x8xi32> to vector<18x8xi32>
    %8 = arith.cmpi eq, %6, %7 : vector<18x8xi32>
    %9 = arith.extui %8 : vector<18x8xi1> to vector<18x8xi32>
    %10 = arith.sitofp %9 : vector<18x8xi32> to vector<18x8xf32>
    %cst = arith.constant 3.000000e+01 : f32
    %11 = vector.broadcast %cst : f32 to vector<18x8xf32>
    %12 = arith.mulf %11, %3 : vector<18x8xf32>
    %13 = vector.broadcast %5 : vector<18x1xf32> to vector<18x8xf32>
    %14 = arith.mulf %10, %13 : vector<18x8xf32>
    %15 = arith.subf %12, %14 : vector<18x8xf32>
    %cst_6 = arith.constant dense<0xFF800000> : vector<8xf32>
    %16 = vector.multi_reduction <maximumf>, %15, %cst_6 [0] : vector<18x8xf32> to vector<8xf32>
    %17 = vector.shape_cast %16 : vector<8xf32> to vector<1x8xf32>
    %18 = vector.broadcast %17 : vector<1x8xf32> to vector<18x8xf32>
    %19 = arith.subf %15, %18 : vector<18x8xf32>
    %20 = math.exp %19 : vector<18x8xf32>
    %cst_7 = arith.constant dense<0.000000e+00> : vector<8xf32>
    %21 = vector.multi_reduction <add>, %20, %cst_7 [0] : vector<18x8xf32> to vector<8xf32>
    %22 = vector.shape_cast %21 : vector<8xf32> to vector<1x8xf32>
    %23 = math.log %22 : vector<1x8xf32>
    %24 = arith.addf %17, %23 : vector<1x8xf32>
    %25 = arith.mulf %10, %15 : vector<18x8xf32>
    %cst_8 = arith.constant dense<0.000000e+00> : vector<8xf32>
    %26 = vector.multi_reduction <add>, %25, %cst_8 [0] : vector<18x8xf32> to vector<8xf32>
    %27 = vector.shape_cast %26 : vector<8xf32> to vector<1x8xf32>
    %28 = arith.subf %24, %27 : vector<1x8xf32>
    %c0_9 = arith.constant 0 : index
    %c0_10 = arith.constant 0 : index
    %29 = vector.load %arg4[%c0_9, %c0_10] : memref<1x1xf32, #tpu.memory_space<vmem>>, vector<1x1xf32>
    %30 = vector.shape_cast %28 : vector<1x8xf32> to vector<1x1x8xf32>
    %cst_11 = arith.constant dense<0.000000e+00> : vector<1xf32>
    %31 = vector.multi_reduction <add>, %30, %cst_11 [1, 2] : vector<1x1x8xf32> to vector<1xf32>
    %32 = vector.shape_cast %31 : vector<1xf32> to vector<1x1x1xf32>
    %33 = vector.extract %32[0, 0, 0] : f32 from vector<1x1x1xf32>
    %34 = vector.broadcast %33 : f32 to vector<1x1xf32>
    %35 = arith.addf %29, %34 : vector<1x1xf32>
    %c0_12 = arith.constant 0 : index
    %c0_13 = arith.constant 0 : index
    %36 = vector.load %arg4[%c0_12, %c0_13] : memref<1x1xf32, #tpu.memory_space<vmem>>, vector<1x1xf32>
    tpu.vector_store %arg4[%c0_12, %c0_13], %35 {strides = array<i32>} : memref<1x1xf32, #tpu.memory_space<vmem>>, vector<1x1xf32>,
    %c0_i32_14 = arith.constant 0 : i32
    %37 = arith.cmpi eq, %arg0, %c0_i32_14 : i32
    %38 = arith.extui %37 : i1 to i32
    %c0_i32_15 = arith.constant 0 : i32
    %39 = arith.cmpi ne, %38, %c0_i32_15 : i32
    scf.if %39 {
      %c0_16 = arith.constant 0 : index
      %c0_17 = arith.constant 0 : index
      %40 = vector.load %arg4[%c0_16, %c0_17] : memref<1x1xf32, #tpu.memory_space<vmem>>, vector<1x1xf32>
      %cst_18 = arith.constant 1.250000e-01 : f32
      %41 = vector.broadcast %cst_18 : f32 to vector<1x1xf32>
      %42 = arith.mulf %40, %41 : vector<1x1xf32>
      %c0_19 = arith.constant 0 : index
      %c0_20 = arith.constant 0 : index
      %43 = vector.load %arg4[%c0_19, %c0_20] : memref<1x1xf32, #tpu.memory_space<vmem>>, vector<1x1xf32>
      tpu.vector_store %arg4[%c0_19, %c0_20], %42 {strides = array<i32>} : memref<1x1xf32, #tpu.memory_space<vmem>>, vector<1x1xf32>,
    } else {
    }
    return
  }
  func.func @transform_0(%arg0: i32) -> (i32, i32) {
    %c0_i32 = arith.constant 0 : i32
    %c0_i32_0 = arith.constant 0 : i32
    return %c0_i32, %arg0 : i32, i32
  }
  func.func @transform_1(%arg0: i32) -> (i32, i32) {
    %c0_i32 = arith.constant 0 : i32
    %c0_i32_0 = arith.constant 0 : i32
    return %c0_i32, %arg0 : i32, i32
  }
  func.func @transform_2(%arg0: i32) -> (i32, i32) {
    %c0_i32 = arith.constant 0 : i32
    %c0_i32_0 = arith.constant 0 : i32
    %c0_i32_1 = arith.constant 0 : i32
    return %c0_i32, %c0_i32_0 : i32, i32
  }
  func.func @transform_3(%arg0: i32) -> (i32, i32) {
    %c0_i32 = arith.constant 0 : i32
    %c0_i32_0 = arith.constant 0 : i32
    %c0_i32_1 = arith.constant 0 : i32
    return %c0_i32, %c0_i32_0 : i32, i32
  }
}

</mosaic_0001>

<bundles_post_ra>
// kernel: tpu_custom_call.1
= control target key start
LH: loop header
LB: loop body
LE: loop exit
PB: predicated region body
PF: predicated region fallthrough
CT: control target
= control target key end

     0   :  { %v199_v2 = vmov 0   ;;  %s271_s0 = inlined_call_operand.vmem [shape: f32[18,8], index: 0, kind: input, shape index: {}]   ;;  %s272_s1 = inlined_call_operand.vmem [shape: s32[1,8], index: 1, kind: input, shape index: {}]   ;;  %s273_s2 = inlined_call_operand.vmem [shape: f32[18,1], index: 2, kind: input, shape index: {}]   ;;  %s274_s3 = inlined_call_operand.hbm [shape: f32[1,1], index: 3, kind: output, shape index: {}]  }
   0x1   :  { %v25_v0 = vld [vmem:[%s273_s2] sm:$0xff]  ;;  %v27_v1 = vld [vmem:[%s273_s2 + $0x10] sm:$0x3]  ;;  %165 = vset.pattern.permute.xlu0 %v199_v2  ;;  %166 = vset.pattern.permute.xlu1 %v199_v2 }
   0x2   :  { %8 = vsyncpa [#allocation3], 0  ;;  %50 = vperm.xlu0 %165, %v25_v0   ;;  %60 = vperm.xlu1 %166, %v27_v1   ;;  %v26_v3 = vld [vmem:[%s273_s2 + $0x8] sm:$0xff]  ;;  %v28_v4 = vlaneseq  ;;  %v156_v7 = vld [vmem:[%s272_s1] ss:$0 sm:$0xff]  ;;  %v200_v10 = vmov 0.0  }
   0x3   :  { %v21_v9 = vld [vmem:[%s271_s0] sm:$0xff]  ;;  %v23_v12 = vld [vmem:[%s271_s0 + $0x10] sm:$0x3]  ;;  %v22_v15 = vld [vmem:[%s271_s0 + $0x8] sm:$0xff]  ;;  %vm69_vm3 = vcmask 64512   ;;  %vm72_vm4 = vcmask 58368  }
   0x4   :  { %v29_v5 = vshrl.u32 %v28_v4, 7  ;;  %v45_v17 = vmul.f32 30.0, %v21_v9  ;;  %v47_v19 = vmul.f32 30.0, %v23_v12  ;;  %v46_v22 = vmul.f32 30.0, %v22_v15  ;;  %s201_s24 = smov [#allocation2]  }
   0x5   :  { %vm121_vm5 = vcmask 57344   ;;  %vm19_vm6 = vcmask 0   ;;  %s148_s25 = sshll.u32 %s201_s24, 4  ;;  %s149_s25 = int_to_ptr.vmem [resolvable:$true] %s148_s25 }
   0x6   :  { %55 = vperm.xlu0 %165, %v26_v3   ;;  %v31_v6 = vadd.s32 16, %v29_v5  ;;  %vm36_vm0 = vcmp.eq.s32.totalorder %v29_v5, %v156_v7  ;;  %v30_v8 = vadd.s32 8, %v29_v5  ;;  %20 = vst.msk [vmem:[#allocation2] sm:$0x1] %vm19_vm6, %v200_v10  ;;  %s175_s26 = scalar_lea.vmem %s149_s25, 16  ;;  %s179_s27 = scalar_lea.vmem %s149_s25, 32 }
   0x7   :  { %v157_v11 = vsel %vm36_vm0, 1.0, %v200_v10  ;;  %p176_p0 = scmp.ne.s32.totalorder %s149_s25, %s175_s26  ;;  %p180_p1 = scmp.lt.s32.totalorder %s149_s25, %s149_s25 }
   0x8   :  { %vm38_vm1 = vcmp.eq.s32.totalorder %v31_v6, %v156_v7  ;;  %vm37_vm2 = vcmp.eq.s32.totalorder %v30_v8, %v156_v7  ;;  %p181_p2 = scmp.lt.s32.totalorder %s179_s27, %s175_s26 }
   0x9   :  { %v159_v13 = vsel %vm38_vm1, 1.0, %v200_v10  ;;  %v158_v21 = vsel %vm37_vm2, 1.0, %v200_v10 }
   0xa   :  { %p182_p3 = por %p181_p2, %p180_p1 }
   0xc   :  { %p183_p4 = pnand %p182_p3, %p176_p0 }
  0x81   :  { %v51_v14 = vpop.permute.xlu0 %50  ;;  %v61_v16 = vpop.permute.xlu1 %60 }
  0x82   :  { %v63_v18 = vmul.f32 %v157_v11, %v51_v14  ;;  %v65_v20 = vmul.f32 %v159_v13, %v61_v16 }
  0x84   :  { %v66_v24 = vsub.f32 %v45_v17, %v63_v18  ;;  %v68_v26 = vsub.f32 %v47_v19, %v65_v20 }
  0x85   :  { %v56_v23 = vpop.permute.xlu0 %55 }
  0x86   :  { %v64_v25 = vmul.f32 %v158_v21, %v56_v23  ;;  %v70_v28 = vsel %vm69_vm3, %v66_v24, -inf  ;;  %v73_v30 = vsel %vm72_vm4, %v68_v26, -inf  ;;  %v105_v46 = vmul.f32 %v157_v11, %v66_v24 }
  0x87   :  { %v107_v51 = vmul.f32 %v159_v13, %v68_v26 }
  0x88   :  { %v67_v27 = vsub.f32 %v46_v22, %v64_v25  ;;  %v108_v54 = vsel %vm69_vm3, %v105_v46, 0.0  ;;  %v120_v22 = vld [vmem:[#allocation2] sm:$0x1] }
  0x89   :  { %v111_v59 = vsel %vm72_vm4, %v107_v51, 0.0 }
  0x8a   :  { %v71_v29 = vsel %vm69_vm3, %v67_v27, -inf  ;;  %v106_v45 = vmul.f32 %v158_v21, %v67_v27 }
  0x8b   :  { %v74_v31 = vmax.f32 %v70_v28, %v71_v29 }
  0x8c   :  { %v109_v49 = vsel %vm69_vm3, %v106_v45, 0.0 }
  0x8d   :  { %v75_v32 = vmax.f32 %v74_v31, %v73_v30  ;;  %v110_v56 = vadd.f32 %v109_v49, %v108_v54 }
  0x8f   :  { %v76_v33 = vrot.slane %v75_v32, 4  ;;  %v112_v61 = vadd.f32 %v111_v59, %v110_v56 }
  0x91   :  { %v77_v34 = vmax.f32 %v75_v32, %v76_v33  ;;  %v113_v0 = vrot.slane %v112_v61, 4 }
  0x93   :  { %v78_v35 = vrot.slane %v77_v34, 2  ;;  %v114_v3 = vadd.f32 %v113_v0, %v112_v61 }
  0x95   :  { %v79_v36 = vmax.f32 %v77_v34, %v78_v35  ;;  %v115_v5 = vrot.slane %v114_v3, 2 }
  0x97   :  { %v80_v37 = vrot.slane %v79_v36, 1  ;;  %v116_v6 = vadd.f32 %v115_v5, %v114_v3 }
  0x99   :  { %v81_v38 = vmax.f32 %v79_v36, %v80_v37  ;;  %v117_v7 = vrot.slane %v116_v6, 1 }
  0x9b   :  { %v82_v39 = vsub.f32 %v66_v24, %v81_v38  ;;  %v83_v40 = vsub.f32 %v67_v27, %v81_v38  ;;  %v84_v41 = vsub.f32 %v68_v26, %v81_v38  ;;  %v118_v12 = vadd.f32 %v117_v7, %v116_v6 }
  0x9d   :  { %v85_v42 = vmul.f32 1.442695, %v82_v39  ;;  %v87_v43 = vmul.f32 1.442695, %v83_v40  ;;  %v89_v44 = vmul.f32 1.442695, %v84_v41 }
  0x9f   :  { %167 = vpow2.f32 %v85_v42 }
  0xa0   :  { %169 = vpow2.f32 %v87_v43 }
  0xa1   :  { %171 = vpow2.f32 %v89_v44 }
  0xa9   :  { %v168_v47 = vpop.eup %167 }
  0xaa   :  { %v170_v48 = vpop.eup %169  ;;  %v91_v50 = vsel %vm69_vm3, %v168_v47, 0.0 }
  0xab   :  { %v172_v52 = vpop.eup %171  ;;  %v92_v53 = vsel %vm69_vm3, %v170_v48, 0.0 }
  0xac   :  { %v93_v55 = vadd.f32 %v92_v53, %v91_v50  ;;  %v94_v57 = vsel %vm72_vm4, %v172_v52, 0.0 }
  0xae   :  { %v95_v58 = vadd.f32 %v94_v57, %v93_v55 }
  0xb0   :  { %v96_v60 = vrot.slane %v95_v58, 4 }
  0xb2   :  { %v97_v62 = vadd.f32 %v96_v60, %v95_v58 }
  0xb4   :  { %v98_v63 = vrot.slane %v97_v62, 2 }
  0xb6   :  { %v99_v1 = vadd.f32 %v98_v63, %v97_v62 }
  0xb8   :  { %v100_v2 = vrot.slane %v99_v1, 1 }
  0xba   :  { %v101_v4 = vadd.f32 %v100_v2, %v99_v1 }
  0xbc   :  { %173 = vlog2.f32 %v101_v4 }
  0xc6   :  { %v174_v8 = vpop.eup %173 }
  0xc7   :  { %v103_v9 = vmul.f32 0.6931472, %v174_v8 }
  0xc9   :  { %v104_v11 = vadd.f32 %v103_v9, %v81_v38 }
  0xcb   :  { %v119_v13 = vsub.f32 %v104_v11, %v118_v12 }
  0xcd   :  { %v122_v14 = vsel %vm121_vm5, %v119_v13, 0.0 }
  0xce   :  { %123 = vadd.xlane.f32.xlu1 %v122_v14 }
 0x15b   :  { %v124_v15 = vpop.xlane.xlu1 %123 }
 0x15c   :  { %v125_v16 = vrot.slane %v124_v15, 4 }
 0x15e   :  { %v126_v17 = vadd.f32 %v125_v16, %v124_v15 }
 0x160   :  { %v127_v18 = vrot.slane %v126_v17, 2 }
 0x162   :  { %v128_v19 = vadd.f32 %v127_v18, %v126_v17 }
 0x164   :  { %v129_v20 = vrot.slane %v128_v19, 1 }
 0x166   :  { %v130_v21 = vadd.f32 %v129_v20, %v128_v19 }
 0x168   :  { %160 = vpush %v130_v21 }
 0x199   :  { %s161_s0 = spop %160 }
 0x19a   :  { %v132_v23 = vstv %s161_s0 }
 0x19b   :  { %v133_v24 = vadd.f32 %v132_v23, %v120_v22 }
 0x19d   :  { %135 = vst.msk [vmem:[#allocation2] sm:$0x1] %vm19_vm6, %v133_v24 }
 0x1a4   :  { %v139_v25 = vld [vmem:[#allocation2] sm:$0x1] }
 0x1a5   :  { %v140_v26 = vmul.f32 0.125, %v139_v25 }
 0x1a7   :  { %141 = vst.msk [vmem:[#allocation2] sm:$0x1] %vm19_vm6, %v140_v26 }
 0x1a8   :  { %186 = shalt.err (!%p183_p4)
}
 0x1a9   :  { %s187_s30 = scalar_lea.hbm %s274_s3, 16 }
 0x1aa   :  { %p188_p5 = scmp.ne.s32.totalorder %s274_s3, %s187_s30  ;;  %p191_p6 = scmp.lt.u32.totalorder %s187_s30, %s274_s3 }
 0x1ac   :  { %p193_p7 = pnand %p191_p6, %p188_p5 }
 0x1ae   :  { %196 = shalt.err (!%p193_p7)
}
 0x1af   :  { %151 = dma.vmem_to_hbm [thread:$0]  %s149_s25, 16, %s274_s3, [#allocation3]  }
 0x1b0   :  { %197 = dma.done.wait [#allocation3], 16  }
 0x1b1   :  { %198 = vsyncadd [#allocation3], 4294967280 }
 0x1b2   :  { %155 = vsyncpa [#allocation3], 1 }

</bundles_post_ra>
